<compile_context>
chip_gen: v7x
topology: tpu7x:2x2x1
jax: 0.10.0
libtpu: 0.0.40
codegen_flags: <defaults>
</compile_context>

<pallas_src>
import functools

import jax
import jax.numpy as jnp
from jax.experimental import pallas as pl
from jax.experimental.pallas import tpu as pltpu


def one_layer_lstm_kernel(x_ref, wih_ref, whh_ref, b_ref, wlin_ref, blin_ref,
                          out_ref, gx_ref, *, L, H, Bb):
    """Forward pass for one batch block, fully resident in VMEM.

    x_ref   : (L*Bb, H_in)  row t*Bb + bl  <->  (batch i*Bb + bl, time t)
    wih_ref : (H_in, 4H)    transposed weight_ih  (gate order i, f, g, o)
    whh_ref : (H,    4H)    transposed weight_hh
    b_ref   : (1,    4H)    b_ih + b_hh
    wlin_ref: (L*H,  Hp)    transposed linear weight, lane-padded to Hp
    blin_ref: (1,    Hp)    linear bias (padded cols = -1e30 -> softmax 0)
    out_ref : (Bb,   Hp)    softmax probabilities for this batch block
    gx_ref  : (L*Bb, 4H)    VMEM scratch holding the hoisted input projection
    """
    whh = whh_ref[...]                  # (H, 4H): tiny, reused every timestep
    w_dtype = whh.dtype
    Hp = out_ref.shape[1]

    # --- Hoisted input projection: one matmul for all L timesteps, stored in
    # explicit VMEM scratch so it never occupies vregs across the loop. ------
    gx_ref[...] = (jnp.dot(x_ref[...], wih_ref[...],
                           preferred_element_type=jnp.float32)
                   + b_ref[...])                                   # (L*Bb, 4H)

    h = jnp.zeros((Bb, H), jnp.float32)
    c = jnp.zeros((Bb, H), jnp.float32)
    y = jnp.zeros((Bb, Hp), jnp.float32)

    # L is small and static -> unrolled Python loop.
    # TODO(synk): past L ~ 16 switch to lax.fori_loop(unroll=True) (or a
    # (nb, L) grid with h/c/y carried in scratch) so live ranges stay bounded.
    for t in range(L):
        # Only the recurrent matmul remains on the serial critical path.
        # Cast h to the weight dtype so a bf16 weight path actually uses the
        # bf16 MXU (accumulation stays f32).
        gates = gx_ref[t * Bb:(t + 1) * Bb, :] + jnp.dot(
            h.astype(w_dtype), whh, preferred_element_type=jnp.float32)

        if H % 128 == 0:
            # Gate chunks are vreg-aligned: don't spend EUP work on lanes
            # whose activation is discarded.
            if_g = jax.nn.sigmoid(gates[:, 0:2 * H])
            i_g = if_g[:, 0:H]
            f_g = if_g[:, H:2 * H]
            g_g = jnp.tanh(gates[:, 2 * H:3 * H])
            o_g = jax.nn.sigmoid(gates[:, 3 * H:4 * H])
        else:
            # 4H is sub-vreg: full-width sigmoid/tanh (2 EUP pushes) beats
            # four lane-sliced activations.
            sig = jax.nn.sigmoid(gates)
            tan = jnp.tanh(gates)
            i_g = sig[:, 0 * H:1 * H]
            f_g = sig[:, 1 * H:2 * H]
            g_g = tan[:, 2 * H:3 * H]
            o_g = sig[:, 3 * H:4 * H]

        c = f_g * c + i_g * g_g
        h = o_g * jnp.tanh(c)

        # Accumulating final linear (replaces the lane-concat of all h_t).
        # Slice the weight *ref* per step (free) instead of hoisting the whole
        # (L*H, Hp) slab into vregs.
        y = y + jnp.dot(jnp.maximum(h, 0.0).astype(w_dtype),
                        wlin_ref[t * H:(t + 1) * H, :],
                        preferred_element_type=jnp.float32)

    y = y + blin_ref[...]

    # Softmax over the lane-dense feature axis; padded logits are -1e30 so
    # they contribute exactly 0.  Reciprocal on the EUP slot + one Newton step
    # stays within f32-level tolerance.
    y = y - jnp.max(y, axis=-1, keepdims=True)
    e = jnp.exp(y)
    s = jnp.sum(e, axis=-1, keepdims=True)
    inv = pl.reciprocal(s, approx=True)
    inv = inv * (2.0 - s * inv)
    out_ref[...] = e * inv


def prepare_params(params, compute_dtype=jnp.float32):
    """Pre-transpose / cast / lane-pad the PyTorch-layout weights ONCE.

    On v6e/v7x pass compute_dtype=jnp.bfloat16 to feed the MXU bf16 weights
    (the kernel casts h/relu(h) to match; accumulation stays f32).  Keep f32
    on v5e.  Loosen the test tolerance if you switch to bf16.
    """
    w_ih, w_hh, b_ih, b_hh, w_lin, b_lin = params
    H = w_hh.shape[1]
    H_out = w_lin.shape[0]
    H_out_pad = max(128, -(-H_out // 128) * 128)      # lane-dense output

    wih_t = jnp.transpose(w_ih).astype(compute_dtype)            # (H_in, 4H)
    whh_t = jnp.transpose(w_hh).astype(compute_dtype)            # (H, 4H)
    b = (b_ih + b_hh).reshape(1, 4 * H).astype(jnp.float32)      # (1, 4H)

    wlin_t = jnp.transpose(w_lin).astype(compute_dtype)          # (L*H, H_out)
    wlin_t = jnp.pad(wlin_t, ((0, 0), (0, H_out_pad - H_out)))   # zero cols
    # Padded bias columns get -1e30 -> exp(logit - max) == 0 in the softmax.
    blin = jnp.full((1, H_out_pad), -1e30, jnp.float32)
    blin = blin.at[0, :H_out].set(b_lin.astype(jnp.float32))

    return (wih_t, whh_t, b, wlin_t, blin, H_out)


def _default_max_bb():
    """Bb cap: 256 on the 256-wide MXU chips (v6e/v7x), 128 on v5e."""
    try:
        kind = jax.devices()[0].device_kind.lower()
    except Exception:
        return 128
    return 256 if ("v6" in kind or "v7" in kind) else 128


def _pick_batch_block(b_pad, max_bb):
    """Batch block (multiple of 8, <= max_bb) dividing b_pad.

    Keeps nb = b_pad // Bb >= 4 once the batch allows (2 per TensorCore on
    v7x), >= 2 when b_pad >= 16, so the grid pipeline and megacore sharding
    have work to overlap.
    """
    target_nb = 4 if b_pad >= 32 else (2 if b_pad >= 16 else 1)
    bb = min(max_bb, b_pad // target_nb)
    bb = max(8, (bb // 8) * 8)
    while b_pad % bb:
        bb -= 8
    return bb


def _vmem_limit_bytes(L, Bb, H_in, H, H_out_pad):
    """Generous VMEM budget for the fully-resident design (v7x has 64 MiB)."""
    def tile(r, c, dbl=True):
        r = -(-r // 8) * 8
        c = -(-c // 128) * 128
        return r * c * 4 * (2 if dbl else 1)     # f32, double-buffered tiles
    est = (tile(L * Bb, H_in) + tile(H_in, 4 * H) + tile(H, 4 * H)
           + tile(1, 4 * H) + tile(L * H, H_out_pad) + tile(1, H_out_pad)
           + tile(Bb, H_out_pad) + tile(L * Bb, 4 * H, dbl=False))
    return min(max(2 * est + (4 << 20), 16 << 20), 48 << 20)


def one_layer_lstm_forward(x, prepared, max_bb=None):
    """x: (B, L, H_in) batch-first, prepared: output of prepare_params()."""
    wih_t, whh_t, b, wlin_t, blin, H_out = prepared
    B, L, H_in = x.shape
    H = whh_t.shape[0]
    H_out_pad = wlin_t.shape[1]

    if max_bb is None:
        max_bb = _default_max_bb()

    # Pad batch to a multiple of 8 sublanes (f32 tile is (8, 128)).
    B_pad = max(8, ((B + 7) // 8) * 8)
    if B_pad != B:
        x = jnp.pad(x, ((0, B_pad - B), (0, 0), (0, 0)))
    Bb = _pick_batch_block(B_pad, max_bb)
    nb = B_pad // Bb

    # Per-block, time-major rows:  block i, row t*Bb + bl  <-  x[i*Bb + bl, t]
    # TODO(synk): on v5e, H_in << 128 makes this x tile lane-sparse; pack a
    # lane-dense (Bb, L*H_in) layout once L*H_in % 128 == 0 if it matters.
    x_blk = (x.astype(wih_t.dtype)
              .reshape(nb, Bb, L, H_in)
              .transpose(0, 2, 1, 3)
              .reshape(nb, L * Bb, H_in))

    kernel = functools.partial(one_layer_lstm_kernel, L=L, H=H, Bb=Bb)

    out = pl.pallas_call(
        kernel,
        out_shape=jax.ShapeDtypeStruct((B_pad, H_out_pad), jnp.float32),
        grid=(nb,),
        in_specs=[
            pl.BlockSpec((pl.Squeezed(), L * Bb, H_in), lambda i: (i, 0, 0)),
            pl.BlockSpec(wih_t.shape, lambda i: (0, 0)),
            pl.BlockSpec(whh_t.shape, lambda i: (0, 0)),
            pl.BlockSpec(b.shape, lambda i: (0, 0)),
            pl.BlockSpec(wlin_t.shape, lambda i: (0, 0)),
            pl.BlockSpec(blin.shape, lambda i: (0, 0)),
        ],
        out_specs=pl.BlockSpec((Bb, H_out_pad), lambda i: (i, 0)),
        scratch_shapes=[pltpu.VMEM((L * Bb, 4 * H), jnp.float32)],
        # Batch blocks are independent -> shard across TensorCores (v7x).
        compiler_params=pltpu.CompilerParams(
            dimension_semantics=("parallel",),
            vmem_limit_bytes=_vmem_limit_bytes(L, Bb, H_in, H, H_out_pad)),
    )(x_blk, wih_t, whh_t, b, wlin_t, blin)

    return out[:B, :H_out]


def reference_forward(x, params):
    """Pure-JAX reference identical to the PyTorch forward semantics."""
    w_ih, w_hh, b_ih, b_hh, w_lin, b_lin = params
    B, L, H_in = x.shape
    H = w_hh.shape[1]

    def step(carry, xt):
        h, c = carry
        gates = xt @ w_ih.T + b_ih + h @ w_hh.T + b_hh
        i, f, g, o = jnp.split(gates, 4, axis=1)
        i, f, o = jax.nn.sigmoid(i), jax.nn.sigmoid(f), jax.nn.sigmoid(o)
        g = jnp.tanh(g)
        c = f * c + i * g
        h = o * jnp.tanh(c)
        return (h, c), h

    init = (jnp.zeros((B, H), jnp.float32), jnp.zeros((B, H), jnp.float32))
    _, hs = jax.lax.scan(step, init, jnp.transpose(x, (1, 0, 2)))
    hs = jnp.transpose(hs, (1, 0, 2))                       # (B, L, H)
    act = jnp.maximum(hs, 0.0).reshape(B, L * H)
    y = act @ w_lin.T + b_lin
    return jax.nn.softmax(y, axis=1)


def init_params(key, H_in, H, L, H_out):
    """Deterministic PyTorch-shaped parameters (uniform +/- 1/sqrt(H))."""
    k = 1.0 / jnp.sqrt(jnp.float32(H))
    ks = jax.random.split(key, 6)
    w_ih = jax.random.uniform(ks[0], (4 * H, H_in), jnp.float32, -k, k)
    w_hh = jax.random.uniform(ks[1], (4 * H, H), jnp.float32, -k, k)
    b_ih = jax.random.uniform(ks[2], (4 * H,), jnp.float32, -k, k)
    b_hh = jax.random.uniform(ks[3], (4 * H,), jnp.float32, -k, k)
    kl = 1.0 / jnp.sqrt(jnp.float32(L * H))
    w_lin = jax.random.uniform(ks[4], (H_out, L * H), jnp.float32, -kl, kl)
    b_lin = jax.random.uniform(ks[5], (H_out,), jnp.float32, -kl, kl)
    return (w_ih, w_hh, b_ih, b_hh, w_lin, b_lin)


if __name__ == "__main__":
    B, L, H_in, H, H_out = 4, 8, 16, 32, 8

    root = jax.random.PRNGKey(0)
    k_x, k_p = jax.random.split(root)
    x = jax.random.normal(k_x, (B, L, H_in), jnp.float32)
    params = init_params(k_p, H_in, H, L, H_out)

    prepared = prepare_params(params)           # one-time weight prep (f32)
    out = one_layer_lstm_forward(x, prepared)
    out = jax.block_until_ready(out)

    ref = jax.block_until_ready(reference_forward(x, params))
    assert out.shape == (B, H_out)
    assert jnp.allclose(out, ref, rtol=1e-3, atol=1e-5), (
        f"mismatch: max abs err {jnp.max(jnp.abs(out - ref))}")

    print("KERNEL_OK")
</pallas_src>

<mosaic_0001>
module attributes {stable_mosaic.version = 11 : i64} {
  func.func @one_layer_lstm_kernel(%arg0: i32, %arg1: memref<1x64x16xf32, #tpu.memory_space<vmem>>, %arg2: memref<16x128xf32, #tpu.memory_space<vmem>>, %arg3: memref<32x128xf32, #tpu.memory_space<vmem>>, %arg4: memref<1x128xf32, #tpu.memory_space<vmem>>, %arg5: memref<256x128xf32, #tpu.memory_space<vmem>>, %arg6: memref<1x128xf32, #tpu.memory_space<vmem>>, %arg7: memref<8x128xf32, #tpu.memory_space<vmem>>, %arg8: memref<64x128xf32, #tpu.memory_space<vmem>>) attributes {dimension_semantics = [#tpu.dimension_semantics<parallel>], iteration_bounds = array<i64: 1>, scalar_prefetch = 0 : i64, scratch_operands = 1 : i64, tpu.core_type = #tpu.core_type<tc>, window_params = [{transform_indices = @transform_0, window_bounds = array<i64: 1, 64, 16>}, {pipeline_mode = #tpu.pipeline_mode<synchronous>, transform_indices = @transform_1, window_bounds = array<i64: 16, 128>}, {pipeline_mode = #tpu.pipeline_mode<synchronous>, transform_indices = @transform_2, window_bounds = array<i64: 32, 128>}, {pipeline_mode = #tpu.pipeline_mode<synchronous>, transform_indices = @transform_3, window_bounds = array<i64: 1, 128>}, {pipeline_mode = #tpu.pipeline_mode<synchronous>, transform_indices = @transform_4, window_bounds = array<i64: 256, 128>}, {pipeline_mode = #tpu.pipeline_mode<synchronous>, transform_indices = @transform_5, window_bounds = array<i64: 1, 128>}, {transform_indices = @transform_6, window_bounds = array<i64: 8, 128>}]} {
    %c0 = arith.constant 0 : index
    %c0_0 = arith.constant 0 : index
    %0 = vector.load %arg3[%c0, %c0_0] : memref<32x128xf32, #tpu.memory_space<vmem>>, vector<32x128xf32>
    %c0_1 = arith.constant 0 : index
    %c0_2 = arith.constant 0 : index
    %c0_3 = arith.constant 0 : index
    %1 = vector.load %arg1[%c0_1, %c0_2, %c0_3] : memref<1x64x16xf32, #tpu.memory_space<vmem>>, vector<1x64x16xf32>
    %2 = vector.shape_cast %1 : vector<1x64x16xf32> to vector<64x16xf32>
    %c0_4 = arith.constant 0 : index
    %c0_5 = arith.constant 0 : index
    %3 = vector.load %arg2[%c0_4, %c0_5] : memref<16x128xf32, #tpu.memory_space<vmem>>, vector<16x128xf32>
    %cst = arith.constant dense<0.000000e+00> : vector<64x128xf32>
    %4 = tpu.matmul %2, %3, %cst {dimension_numbers = #tpu.dot_dimension_numbers<[1], [0], [0], [1], [0, 0, 1, 1], [], []>} : vector<64x16xf32>, vector<16x128xf32>, vector<64x128xf32> -> vector<64x128xf32>
    %c0_6 = arith.constant 0 : index
    %c0_7 = arith.constant 0 : index
    %5 = vector.load %arg4[%c0_6, %c0_7] : memref<1x128xf32, #tpu.memory_space<vmem>>, vector<1x128xf32>
    %6 = vector.broadcast %5 : vector<1x128xf32> to vector<64x128xf32>
    %7 = arith.addf %4, %6 : vector<64x128xf32>
    %c0_8 = arith.constant 0 : index
    %c0_9 = arith.constant 0 : index
    %8 = vector.load %arg8[%c0_8, %c0_9] : memref<64x128xf32, #tpu.memory_space<vmem>>, vector<64x128xf32>
    tpu.vector_store %arg8[%c0_8, %c0_9], %7 {strides = array<i32>} : memref<64x128xf32, #tpu.memory_space<vmem>>, vector<64x128xf32>,
    %cst_10 = arith.constant 0.000000e+00 : f32
    %9 = vector.broadcast %cst_10 : f32 to vector<8x32xf32>
    %cst_11 = arith.constant 0.000000e+00 : f32
    %10 = vector.broadcast %cst_11 : f32 to vector<8x32xf32>
    %cst_12 = arith.constant 0.000000e+00 : f32
    %11 = vector.broadcast %cst_12 : f32 to vector<8x128xf32>
    %c0_13 = arith.constant 0 : index
    %c0_14 = arith.constant 0 : index
    %12 = vector.load %arg8[%c0_13, %c0_14] : memref<64x128xf32, #tpu.memory_space<vmem>>, vector<8x128xf32>
    %cst_15 = arith.constant dense<0.000000e+00> : vector<8x128xf32>
    %13 = tpu.matmul %9, %0, %cst_15 {dimension_numbers = #tpu.dot_dimension_numbers<[1], [0], [0], [1], [0, 0, 1, 1], [], []>} : vector<8x32xf32>, vector<32x128xf32>, vector<8x128xf32> -> vector<8x128xf32>
    %14 = arith.addf %12, %13 : vector<8x128xf32>
    %15 = arith.negf %14 : vector<8x128xf32>
    %16 = math.exp %15 : vector<8x128xf32>
    %cst_16 = arith.constant 1.000000e+00 : f32
    %17 = vector.broadcast %cst_16 : f32 to vector<8x128xf32>
    %18 = arith.addf %17, %16 : vector<8x128xf32>
    %19 = arith.divf %17, %18 : vector<8x128xf32>
    %20 = math.tanh %14 : vector<8x128xf32>
    %21 = vector.extract_strided_slice %19 {offsets = [0, 0], sizes = [8, 32], strides = [1, 1]} : vector<8x128xf32> to vector<8x32xf32>
    %22 = vector.extract_strided_slice %19 {offsets = [0, 32], sizes = [8, 32], strides = [1, 1]} : vector<8x128xf32> to vector<8x32xf32>
    %23 = vector.extract_strided_slice %20 {offsets = [0, 64], sizes = [8, 32], strides = [1, 1]} : vector<8x128xf32> to vector<8x32xf32>
    %24 = vector.extract_strided_slice %19 {offsets = [0, 96], sizes = [8, 32], strides = [1, 1]} : vector<8x128xf32> to vector<8x32xf32>
    %25 = arith.mulf %22, %10 : vector<8x32xf32>
    %26 = arith.mulf %21, %23 : vector<8x32xf32>
    %27 = arith.addf %25, %26 : vector<8x32xf32>
    %28 = math.tanh %27 : vector<8x32xf32>
    %29 = arith.mulf %24, %28 : vector<8x32xf32>
    %cst_17 = arith.constant 0.000000e+00 : f32
    %30 = vector.broadcast %cst_17 : f32 to vector<8x32xf32>
    %31 = arith.maximumf %29, %30 : vector<8x32xf32>
    %c0_18 = arith.constant 0 : index
    %c0_19 = arith.constant 0 : index
    %32 = vector.load %arg5[%c0_18, %c0_19] : memref<256x128xf32, #tpu.memory_space<vmem>>, vector<32x128xf32>
    %cst_20 = arith.constant dense<0.000000e+00> : vector<8x128xf32>
    %33 = tpu.matmul %31, %32, %cst_20 {dimension_numbers = #tpu.dot_dimension_numbers<[1], [0], [0], [1], [0, 0, 1, 1], [], []>} : vector<8x32xf32>, vector<32x128xf32>, vector<8x128xf32> -> vector<8x128xf32>
    %34 = arith.addf %11, %33 : vector<8x128xf32>
    %c8 = arith.constant 8 : index
    %c0_21 = arith.constant 0 : index
    %35 = vector.load %arg8[%c8, %c0_21] : memref<64x128xf32, #tpu.memory_space<vmem>>, vector<8x128xf32>
    %cst_22 = arith.constant dense<0.000000e+00> : vector<8x128xf32>
    %36 = tpu.matmul %29, %0, %cst_22 {dimension_numbers = #tpu.dot_dimension_numbers<[1], [0], [0], [1], [0, 0, 1, 1], [], []>} : vector<8x32xf32>, vector<32x128xf32>, vector<8x128xf32> -> vector<8x128xf32>
    %37 = arith.addf %35, %36 : vector<8x128xf32>
    %38 = arith.negf %37 : vector<8x128xf32>
    %39 = math.exp %38 : vector<8x128xf32>
    %cst_23 = arith.constant 1.000000e+00 : f32
    %40 = vector.broadcast %cst_23 : f32 to vector<8x128xf32>
    %41 = arith.addf %40, %39 : vector<8x128xf32>
    %42 = arith.divf %40, %41 : vector<8x128xf32>
    %43 = math.tanh %37 : vector<8x128xf32>
    %44 = vector.extract_strided_slice %42 {offsets = [0, 0], sizes = [8, 32], strides = [1, 1]} : vector<8x128xf32> to vector<8x32xf32>
    %45 = vector.extract_strided_slice %42 {offsets = [0, 32], sizes = [8, 32], strides = [1, 1]} : vector<8x128xf32> to vector<8x32xf32>
    %46 = vector.extract_strided_slice %43 {offsets = [0, 64], sizes = [8, 32], strides = [1, 1]} : vector<8x128xf32> to vector<8x32xf32>
    %47 = vector.extract_strided_slice %42 {offsets = [0, 96], sizes = [8, 32], strides = [1, 1]} : vector<8x128xf32> to vector<8x32xf32>
    %48 = arith.mulf %45, %27 : vector<8x32xf32>
    %49 = arith.mulf %44, %46 : vector<8x32xf32>
    %50 = arith.addf %48, %49 : vector<8x32xf32>
    %51 = math.tanh %50 : vector<8x32xf32>
    %52 = arith.mulf %47, %51 : vector<8x32xf32>
    %cst_24 = arith.constant 0.000000e+00 : f32
    %53 = vector.broadcast %cst_24 : f32 to vector<8x32xf32>
    %54 = arith.maximumf %52, %53 : vector<8x32xf32>
    %c32 = arith.constant 32 : index
    %c0_25 = arith.constant 0 : index
    %55 = vector.load %arg5[%c32, %c0_25] : memref<256x128xf32, #tpu.memory_space<vmem>>, vector<32x128xf32>
    %cst_26 = arith.constant dense<0.000000e+00> : vector<8x128xf32>
    %56 = tpu.matmul %54, %55, %cst_26 {dimension_numbers = #tpu.dot_dimension_numbers<[1], [0], [0], [1], [0, 0, 1, 1], [], []>} : vector<8x32xf32>, vector<32x128xf32>, vector<8x128xf32> -> vector<8x128xf32>
    %57 = arith.addf %34, %56 : vector<8x128xf32>
    %c16 = arith.constant 16 : index
    %c0_27 = arith.constant 0 : index
    %58 = vector.load %arg8[%c16, %c0_27] : memref<64x128xf32, #tpu.memory_space<vmem>>, vector<8x128xf32>
    %cst_28 = arith.constant dense<0.000000e+00> : vector<8x128xf32>
    %59 = tpu.matmul %52, %0, %cst_28 {dimension_numbers = #tpu.dot_dimension_numbers<[1], [0], [0], [1], [0, 0, 1, 1], [], []>} : vector<8x32xf32>, vector<32x128xf32>, vector<8x128xf32> -> vector<8x128xf32>
    %60 = arith.addf %58, %59 : vector<8x128xf32>
    %61 = arith.negf %60 : vector<8x128xf32>
    %62 = math.exp %61 : vector<8x128xf32>
    %cst_29 = arith.constant 1.000000e+00 : f32
    %63 = vector.broadcast %cst_29 : f32 to vector<8x128xf32>
    %64 = arith.addf %63, %62 : vector<8x128xf32>
    %65 = arith.divf %63, %64 : vector<8x128xf32>
    %66 = math.tanh %60 : vector<8x128xf32>
    %67 = vector.extract_strided_slice %65 {offsets = [0, 0], sizes = [8, 32], strides = [1, 1]} : vector<8x128xf32> to vector<8x32xf32>
    %68 = vector.extract_strided_slice %65 {offsets = [0, 32], sizes = [8, 32], strides = [1, 1]} : vector<8x128xf32> to vector<8x32xf32>
    %69 = vector.extract_strided_slice %66 {offsets = [0, 64], sizes = [8, 32], strides = [1, 1]} : vector<8x128xf32> to vector<8x32xf32>
    %70 = vector.extract_strided_slice %65 {offsets = [0, 96], sizes = [8, 32], strides = [1, 1]} : vector<8x128xf32> to vector<8x32xf32>
    %71 = arith.mulf %68, %50 : vector<8x32xf32>
    %72 = arith.mulf %67, %69 : vector<8x32xf32>
    %73 = arith.addf %71, %72 : vector<8x32xf32>
    %74 = math.tanh %73 : vector<8x32xf32>
    %75 = arith.mulf %70, %74 : vector<8x32xf32>
    %cst_30 = arith.constant 0.000000e+00 : f32
    %76 = vector.broadcast %cst_30 : f32 to vector<8x32xf32>
    %77 = arith.maximumf %75, %76 : vector<8x32xf32>
    %c64 = arith.constant 64 : index
    %c0_31 = arith.constant 0 : index
    %78 = vector.load %arg5[%c64, %c0_31] : memref<256x128xf32, #tpu.memory_space<vmem>>, vector<32x128xf32>
    %cst_32 = arith.constant dense<0.000000e+00> : vector<8x128xf32>
    %79 = tpu.matmul %77, %78, %cst_32 {dimension_numbers = #tpu.dot_dimension_numbers<[1], [0], [0], [1], [0, 0, 1, 1], [], []>} : vector<8x32xf32>, vector<32x128xf32>, vector<8x128xf32> -> vector<8x128xf32>
    %80 = arith.addf %57, %79 : vector<8x128xf32>
    %c24 = arith.constant 24 : index
    %c0_33 = arith.constant 0 : index
    %81 = vector.load %arg8[%c24, %c0_33] : memref<64x128xf32, #tpu.memory_space<vmem>>, vector<8x128xf32>
    %cst_34 = arith.constant dense<0.000000e+00> : vector<8x128xf32>
    %82 = tpu.matmul %75, %0, %cst_34 {dimension_numbers = #tpu.dot_dimension_numbers<[1], [0], [0], [1], [0, 0, 1, 1], [], []>} : vector<8x32xf32>, vector<32x128xf32>, vector<8x128xf32> -> vector<8x128xf32>
    %83 = arith.addf %81, %82 : vector<8x128xf32>
    %84 = arith.negf %83 : vector<8x128xf32>
    %85 = math.exp %84 : vector<8x128xf32>
    %cst_35 = arith.constant 1.000000e+00 : f32
    %86 = vector.broadcast %cst_35 : f32 to vector<8x128xf32>
    %87 = arith.addf %86, %85 : vector<8x128xf32>
    %88 = arith.divf %86, %87 : vector<8x128xf32>
    %89 = math.tanh %83 : vector<8x128xf32>
    %90 = vector.extract_strided_slice %88 {offsets = [0, 0], sizes = [8, 32], strides = [1, 1]} : vector<8x128xf32> to vector<8x32xf32>
    %91 = vector.extract_strided_slice %88 {offsets = [0, 32], sizes = [8, 32], strides = [1, 1]} : vector<8x128xf32> to vector<8x32xf32>
    %92 = vector.extract_strided_slice %89 {offsets = [0, 64], sizes = [8, 32], strides = [1, 1]} : vector<8x128xf32> to vector<8x32xf32>
    %93 = vector.extract_strided_slice %88 {offsets = [0, 96], sizes = [8, 32], strides = [1, 1]} : vector<8x128xf32> to vector<8x32xf32>
    %94 = arith.mulf %91, %73 : vector<8x32xf32>
    %95 = arith.mulf %90, %92 : vector<8x32xf32>
    %96 = arith.addf %94, %95 : vector<8x32xf32>
    %97 = math.tanh %96 : vector<8x32xf32>
    %98 = arith.mulf %93, %97 : vector<8x32xf32>
    %cst_36 = arith.constant 0.000000e+00 : f32
    %99 = vector.broadcast %cst_36 : f32 to vector<8x32xf32>
    %100 = arith.maximumf %98, %99 : vector<8x32xf32>
    %c96 = arith.constant 96 : index
    %c0_37 = arith.constant 0 : index
    %101 = vector.load %arg5[%c96, %c0_37] : memref<256x128xf32, #tpu.memory_space<vmem>>, vector<32x128xf32>
    %cst_38 = arith.constant dense<0.000000e+00> : vector<8x128xf32>
    %102 = tpu.matmul %100, %101, %cst_38 {dimension_numbers = #tpu.dot_dimension_numbers<[1], [0], [0], [1], [0, 0, 1, 1], [], []>} : vector<8x32xf32>, vector<32x128xf32>, vector<8x128xf32> -> vector<8x128xf32>
    %103 = arith.addf %80, %102 : vector<8x128xf32>
    %c32_39 = arith.constant 32 : index
    %c0_40 = arith.constant 0 : index
    %104 = vector.load %arg8[%c32_39, %c0_40] : memref<64x128xf32, #tpu.memory_space<vmem>>, vector<8x128xf32>
    %cst_41 = arith.constant dense<0.000000e+00> : vector<8x128xf32>
    %105 = tpu.matmul %98, %0, %cst_41 {dimension_numbers = #tpu.dot_dimension_numbers<[1], [0], [0], [1], [0, 0, 1, 1], [], []>} : vector<8x32xf32>, vector<32x128xf32>, vector<8x128xf32> -> vector<8x128xf32>
    %106 = arith.addf %104, %105 : vector<8x128xf32>
    %107 = arith.negf %106 : vector<8x128xf32>
    %108 = math.exp %107 : vector<8x128xf32>
    %cst_42 = arith.constant 1.000000e+00 : f32
    %109 = vector.broadcast %cst_42 : f32 to vector<8x128xf32>
    %110 = arith.addf %109, %108 : vector<8x128xf32>
    %111 = arith.divf %109, %110 : vector<8x128xf32>
    %112 = math.tanh %106 : vector<8x128xf32>
    %113 = vector.extract_strided_slice %111 {offsets = [0, 0], sizes = [8, 32], strides = [1, 1]} : vector<8x128xf32> to vector<8x32xf32>
    %114 = vector.extract_strided_slice %111 {offsets = [0, 32], sizes = [8, 32], strides = [1, 1]} : vector<8x128xf32> to vector<8x32xf32>
    %115 = vector.extract_strided_slice %112 {offsets = [0, 64], sizes = [8, 32], strides = [1, 1]} : vector<8x128xf32> to vector<8x32xf32>
    %116 = vector.extract_strided_slice %111 {offsets = [0, 96], sizes = [8, 32], strides = [1, 1]} : vector<8x128xf32> to vector<8x32xf32>
    %117 = arith.mulf %114, %96 : vector<8x32xf32>
    %118 = arith.mulf %113, %115 : vector<8x32xf32>
    %119 = arith.addf %117, %118 : vector<8x32xf32>
    %120 = math.tanh %119 : vector<8x32xf32>
    %121 = arith.mulf %116, %120 : vector<8x32xf32>
    %cst_43 = arith.constant 0.000000e+00 : f32
    %122 = vector.broadcast %cst_43 : f32 to vector<8x32xf32>
    %123 = arith.maximumf %121, %122 : vector<8x32xf32>
    %c128 = arith.constant 128 : index
    %c0_44 = arith.constant 0 : index
    %124 = vector.load %arg5[%c128, %c0_44] : memref<256x128xf32, #tpu.memory_space<vmem>>, vector<32x128xf32>
    %cst_45 = arith.constant dense<0.000000e+00> : vector<8x128xf32>
    %125 = tpu.matmul %123, %124, %cst_45 {dimension_numbers = #tpu.dot_dimension_numbers<[1], [0], [0], [1], [0, 0, 1, 1], [], []>} : vector<8x32xf32>, vector<32x128xf32>, vector<8x128xf32> -> vector<8x128xf32>
    %126 = arith.addf %103, %125 : vector<8x128xf32>
    %c40 = arith.constant 40 : index
    %c0_46 = arith.constant 0 : index
    %127 = vector.load %arg8[%c40, %c0_46] : memref<64x128xf32, #tpu.memory_space<vmem>>, vector<8x128xf32>
    %cst_47 = arith.constant dense<0.000000e+00> : vector<8x128xf32>
    %128 = tpu.matmul %121, %0, %cst_47 {dimension_numbers = #tpu.dot_dimension_numbers<[1], [0], [0], [1], [0, 0, 1, 1], [], []>} : vector<8x32xf32>, vector<32x128xf32>, vector<8x128xf32> -> vector<8x128xf32>
    %129 = arith.addf %127, %128 : vector<8x128xf32>
    %130 = arith.negf %129 : vector<8x128xf32>
    %131 = math.exp %130 : vector<8x128xf32>
    %cst_48 = arith.constant 1.000000e+00 : f32
    %132 = vector.broadcast %cst_48 : f32 to vector<8x128xf32>
    %133 = arith.addf %132, %131 : vector<8x128xf32>
    %134 = arith.divf %132, %133 : vector<8x128xf32>
    %135 = math.tanh %129 : vector<8x128xf32>
    %136 = vector.extract_strided_slice %134 {offsets = [0, 0], sizes = [8, 32], strides = [1, 1]} : vector<8x128xf32> to vector<8x32xf32>
    %137 = vector.extract_strided_slice %134 {offsets = [0, 32], sizes = [8, 32], strides = [1, 1]} : vector<8x128xf32> to vector<8x32xf32>
    %138 = vector.extract_strided_slice %135 {offsets = [0, 64], sizes = [8, 32], strides = [1, 1]} : vector<8x128xf32> to vector<8x32xf32>
    %139 = vector.extract_strided_slice %134 {offsets = [0, 96], sizes = [8, 32], strides = [1, 1]} : vector<8x128xf32> to vector<8x32xf32>
    %140 = arith.mulf %137, %119 : vector<8x32xf32>
    %141 = arith.mulf %136, %138 : vector<8x32xf32>
    %142 = arith.addf %140, %141 : vector<8x32xf32>
    %143 = math.tanh %142 : vector<8x32xf32>
    %144 = arith.mulf %139, %143 : vector<8x32xf32>
    %cst_49 = arith.constant 0.000000e+00 : f32
    %145 = vector.broadcast %cst_49 : f32 to vector<8x32xf32>
    %146 = arith.maximumf %144, %145 : vector<8x32xf32>
    %c160 = arith.constant 160 : index
    %c0_50 = arith.constant 0 : index
    %147 = vector.load %arg5[%c160, %c0_50] : memref<256x128xf32, #tpu.memory_space<vmem>>, vector<32x128xf32>
    %cst_51 = arith.constant dense<0.000000e+00> : vector<8x128xf32>
    %148 = tpu.matmul %146, %147, %cst_51 {dimension_numbers = #tpu.dot_dimension_numbers<[1], [0], [0], [1], [0, 0, 1, 1], [], []>} : vector<8x32xf32>, vector<32x128xf32>, vector<8x128xf32> -> vector<8x128xf32>
    %149 = arith.addf %126, %148 : vector<8x128xf32>
    %c48 = arith.constant 48 : index
    %c0_52 = arith.constant 0 : index
    %150 = vector.load %arg8[%c48, %c0_52] : memref<64x128xf32, #tpu.memory_space<vmem>>, vector<8x128xf32>
    %cst_53 = arith.constant dense<0.000000e+00> : vector<8x128xf32>
    %151 = tpu.matmul %144, %0, %cst_53 {dimension_numbers = #tpu.dot_dimension_numbers<[1], [0], [0], [1], [0, 0, 1, 1], [], []>} : vector<8x32xf32>, vector<32x128xf32>, vector<8x128xf32> -> vector<8x128xf32>
    %152 = arith.addf %150, %151 : vector<8x128xf32>
    %153 = arith.negf %152 : vector<8x128xf32>
    %154 = math.exp %153 : vector<8x128xf32>
    %cst_54 = arith.constant 1.000000e+00 : f32
    %155 = vector.broadcast %cst_54 : f32 to vector<8x128xf32>
    %156 = arith.addf %155, %154 : vector<8x128xf32>
    %157 = arith.divf %155, %156 : vector<8x128xf32>
    %158 = math.tanh %152 : vector<8x128xf32>
    %159 = vector.extract_strided_slice %157 {offsets = [0, 0], sizes = [8, 32], strides = [1, 1]} : vector<8x128xf32> to vector<8x32xf32>
    %160 = vector.extract_strided_slice %157 {offsets = [0, 32], sizes = [8, 32], strides = [1, 1]} : vector<8x128xf32> to vector<8x32xf32>
    %161 = vector.extract_strided_slice %158 {offsets = [0, 64], sizes = [8, 32], strides = [1, 1]} : vector<8x128xf32> to vector<8x32xf32>
    %162 = vector.extract_strided_slice %157 {offsets = [0, 96], sizes = [8, 32], strides = [1, 1]} : vector<8x128xf32> to vector<8x32xf32>
    %163 = arith.mulf %160, %142 : vector<8x32xf32>
    %164 = arith.mulf %159, %161 : vector<8x32xf32>
    %165 = arith.addf %163, %164 : vector<8x32xf32>
    %166 = math.tanh %165 : vector<8x32xf32>
    %167 = arith.mulf %162, %166 : vector<8x32xf32>
    %cst_55 = arith.constant 0.000000e+00 : f32
    %168 = vector.broadcast %cst_55 : f32 to vector<8x32xf32>
    %169 = arith.maximumf %167, %168 : vector<8x32xf32>
    %c192 = arith.constant 192 : index
    %c0_56 = arith.constant 0 : index
    %170 = vector.load %arg5[%c192, %c0_56] : memref<256x128xf32, #tpu.memory_space<vmem>>, vector<32x128xf32>
    %cst_57 = arith.constant dense<0.000000e+00> : vector<8x128xf32>
    %171 = tpu.matmul %169, %170, %cst_57 {dimension_numbers = #tpu.dot_dimension_numbers<[1], [0], [0], [1], [0, 0, 1, 1], [], []>} : vector<8x32xf32>, vector<32x128xf32>, vector<8x128xf32> -> vector<8x128xf32>
    %172 = arith.addf %149, %171 : vector<8x128xf32>
    %c56 = arith.constant 56 : index
    %c0_58 = arith.constant 0 : index
    %173 = vector.load %arg8[%c56, %c0_58] : memref<64x128xf32, #tpu.memory_space<vmem>>, vector<8x128xf32>
    %cst_59 = arith.constant dense<0.000000e+00> : vector<8x128xf32>
    %174 = tpu.matmul %167, %0, %cst_59 {dimension_numbers = #tpu.dot_dimension_numbers<[1], [0], [0], [1], [0, 0, 1, 1], [], []>} : vector<8x32xf32>, vector<32x128xf32>, vector<8x128xf32> -> vector<8x128xf32>
    %175 = arith.addf %173, %174 : vector<8x128xf32>
    %176 = arith.negf %175 : vector<8x128xf32>
    %177 = math.exp %176 : vector<8x128xf32>
    %cst_60 = arith.constant 1.000000e+00 : f32
    %178 = vector.broadcast %cst_60 : f32 to vector<8x128xf32>
    %179 = arith.addf %178, %177 : vector<8x128xf32>
    %180 = arith.divf %178, %179 : vector<8x128xf32>
    %181 = math.tanh %175 : vector<8x128xf32>
    %182 = vector.extract_strided_slice %180 {offsets = [0, 0], sizes = [8, 32], strides = [1, 1]} : vector<8x128xf32> to vector<8x32xf32>
    %183 = vector.extract_strided_slice %180 {offsets = [0, 32], sizes = [8, 32], strides = [1, 1]} : vector<8x128xf32> to vector<8x32xf32>
    %184 = vector.extract_strided_slice %181 {offsets = [0, 64], sizes = [8, 32], strides = [1, 1]} : vector<8x128xf32> to vector<8x32xf32>
    %185 = vector.extract_strided_slice %180 {offsets = [0, 96], sizes = [8, 32], strides = [1, 1]} : vector<8x128xf32> to vector<8x32xf32>
    %186 = arith.mulf %183, %165 : vector<8x32xf32>
    %187 = arith.mulf %182, %184 : vector<8x32xf32>
    %188 = arith.addf %186, %187 : vector<8x32xf32>
    %189 = math.tanh %188 : vector<8x32xf32>
    %190 = arith.mulf %185, %189 : vector<8x32xf32>
    %cst_61 = arith.constant 0.000000e+00 : f32
    %191 = vector.broadcast %cst_61 : f32 to vector<8x32xf32>
    %192 = arith.maximumf %190, %191 : vector<8x32xf32>
    %c224 = arith.constant 224 : index
    %c0_62 = arith.constant 0 : index
    %193 = vector.load %arg5[%c224, %c0_62] : memref<256x128xf32, #tpu.memory_space<vmem>>, vector<32x128xf32>
    %cst_63 = arith.constant dense<0.000000e+00> : vector<8x128xf32>
    %194 = tpu.matmul %192, %193, %cst_63 {dimension_numbers = #tpu.dot_dimension_numbers<[1], [0], [0], [1], [0, 0, 1, 1], [], []>} : vector<8x32xf32>, vector<32x128xf32>, vector<8x128xf32> -> vector<8x128xf32>
    %195 = arith.addf %172, %194 : vector<8x128xf32>
    %c0_64 = arith.constant 0 : index
    %c0_65 = arith.constant 0 : index
    %196 = vector.load %arg6[%c0_64, %c0_65] : memref<1x128xf32, #tpu.memory_space<vmem>>, vector<1x128xf32>
    %197 = vector.broadcast %196 : vector<1x128xf32> to vector<8x128xf32>
    %198 = arith.addf %195, %197 : vector<8x128xf32>
    %cst_66 = arith.constant dense<0xFF800000> : vector<8xf32>
    %199 = vector.multi_reduction <maximumf>, %198, %cst_66 [1] : vector<8x128xf32> to vector<8xf32>
    %200 = vector.shape_cast %199 : vector<8xf32> to vector<8x1xf32>
    %201 = vector.broadcast %200 : vector<8x1xf32> to vector<8x128xf32>
    %202 = arith.subf %198, %201 : vector<8x128xf32>
    %203 = math.exp %202 : vector<8x128xf32>
    %cst_67 = arith.constant dense<0.000000e+00> : vector<8xf32>
    %204 = vector.multi_reduction <add>, %203, %cst_67 [1] : vector<8x128xf32> to vector<8xf32>
    %205 = vector.shape_cast %204 : vector<8xf32> to vector<8x1xf32>
    %206 = tpu.reciprocal %205 {approx = true} : vector<8x1xf32> -> vector<8x1xf32>
    %207 = arith.mulf %205, %206 : vector<8x1xf32>
    %cst_68 = arith.constant 2.000000e+00 : f32
    %208 = vector.broadcast %cst_68 : f32 to vector<8x1xf32>
    %209 = arith.subf %208, %207 : vector<8x1xf32>
    %210 = arith.mulf %206, %209 : vector<8x1xf32>
    %211 = vector.broadcast %210 : vector<8x1xf32> to vector<8x128xf32>
    %212 = arith.mulf %203, %211 : vector<8x128xf32>
    %c0_69 = arith.constant 0 : index
    %c0_70 = arith.constant 0 : index
    %213 = vector.load %arg7[%c0_69, %c0_70] : memref<8x128xf32, #tpu.memory_space<vmem>>, vector<8x128xf32>
    tpu.vector_store %arg7[%c0_69, %c0_70], %212 {strides = array<i32>} : memref<8x128xf32, #tpu.memory_space<vmem>>, vector<8x128xf32>,
    return
  }
  func.func @transform_0(%arg0: i32) -> (i32, i32, i32) {
    %c0_i32 = arith.constant 0 : i32
    %c0_i32_0 = arith.constant 0 : i32
    %c0_i32_1 = arith.constant 0 : i32
    return %arg0, %c0_i32, %c0_i32_0 : i32, i32, i32
  }
  func.func @transform_1(%arg0: i32) -> (i32, i32) {
    %c0_i32 = arith.constant 0 : i32
    %c0_i32_0 = arith.constant 0 : i32
    %c0_i32_1 = arith.constant 0 : i32
    return %c0_i32, %c0_i32_0 : i32, i32
  }
  func.func @transform_2(%arg0: i32) -> (i32, i32) {
    %c0_i32 = arith.constant 0 : i32
    %c0_i32_0 = arith.constant 0 : i32
    %c0_i32_1 = arith.constant 0 : i32
    return %c0_i32, %c0_i32_0 : i32, i32
  }
  func.func @transform_3(%arg0: i32) -> (i32, i32) {
    %c0_i32 = arith.constant 0 : i32
    %c0_i32_0 = arith.constant 0 : i32
    %c0_i32_1 = arith.constant 0 : i32
    return %c0_i32, %c0_i32_0 : i32, i32
  }
  func.func @transform_4(%arg0: i32) -> (i32, i32) {
    %c0_i32 = arith.constant 0 : i32
    %c0_i32_0 = arith.constant 0 : i32
    %c0_i32_1 = arith.constant 0 : i32
    return %c0_i32, %c0_i32_0 : i32, i32
  }
  func.func @transform_5(%arg0: i32) -> (i32, i32) {
    %c0_i32 = arith.constant 0 : i32
    %c0_i32_0 = arith.constant 0 : i32
    %c0_i32_1 = arith.constant 0 : i32
    return %c0_i32, %c0_i32_0 : i32, i32
  }
  func.func @transform_6(%arg0: i32) -> (i32, i32) {
    %c0_i32 = arith.constant 0 : i32
    %c0_i32_0 = arith.constant 0 : i32
    return %arg0, %c0_i32 : i32, i32
  }
}

</mosaic_0001>

<bundles_post_ra>
// kernel: tpu_custom_call.1
= control target key start
LH: loop header
LB: loop body
LE: loop exit
PB: predicated region body
PF: predicated region fallthrough
CT: control target
= control target key end

     0   :  { %11 = vsyncpa [#allocation4], 0  ;;  %s2538_s0 = inlined_call_operand.vmem [shape: f32[1,64,16], index: 0, kind: input, shape index: {}]   ;;  %s2539_s1 = inlined_call_operand.vmem [shape: f32[16,128], index: 1, kind: input, shape index: {}]   ;;  %s2540_s2 = inlined_call_operand.vmem [shape: f32[32,128], index: 2, kind: input, shape index: {}]   ;;  %s2541_s3 = inlined_call_operand.vmem [shape: f32[1,128], index: 3, kind: input, shape index: {}]   ;;  %s2542_s4 = inlined_call_operand.hbm [shape: f32[256,128], index: 4, kind: input, shape index: {}]   ;;  %s2543_s5 = inlined_call_operand.vmem [shape: f32[1,128], index: 5, kind: input, shape index: {}]   ;;  %s2544_s6 = inlined_call_operand.hbm [shape: f32[8,128], index: 6, kind: output, shape index: {}]  }
   0x1   :  { %12 = vsyncpa [#allocation5], 0  ;;  %s2226_s21 = smov [#allocation3]   ;;  %s2178_s25 = scalar_lea.hbm %s2542_s4, 4096 }
   0x2   :  { %s26_s22 = sshll.u32 %s2226_s21, 4  ;;  %p2179_p0 = scmp.ne.s32.totalorder %s2542_s4, %s2178_s25  ;;  %s27_s22 = int_to_ptr.vmem [resolvable:$true] %s26_s22 }
   0x3   :  { %p2182_p1 = scmp.lt.u32.totalorder %s2178_s25, %s2542_s4 }
   0x5   :  { %p2184_p2 = pnand %p2182_p1, %p2179_p0 }
   0x7   :  { %2187 = shalt.err (!%p2184_p2)
}
   0x8   :  { %s2188_s30 = scalar_lea.vmem %s27_s22, 4096  ;;  %p2193_p4 = scmp.lt.s32.totalorder %s27_s22, %s27_s22 }
   0x9   :  { %p2189_p3 = scmp.ne.s32.totalorder %s27_s22, %s2188_s30  ;;  %p2194_p5 = scmp.lt.s32.totalorder %s2188_s30, %s2188_s30 }
   0xb   :  { %p2195_p6 = por %p2194_p5, %p2193_p4 }
   0xd   :  { %p2196_p7 = pnand %p2195_p6, %p2189_p3 }
   0xf   :  { %2199 = shalt.err (!%p2196_p7)
}
  0x10   :  { %s2227_s7 = smov 128   ;;  %s2228_s8 = smov 8  }
  0x11   :  { %32 = dma.hbm_to_vmem [thread:$0]  %s2542_s4, 4096, %s27_s22, [#allocation4], %s2227_s7, %s2227_s7, %s2228_s8  }
  0x12   :  { %2222 = dma.done.wait [#allocation4], 4096  }
  0x13   :  { %2223 = vsyncadd [#allocation4], 4294963200  ;;  %v2229_v0 = vmov 0.0|0.0   ;;  %vm2230_vm0 = vmmov 0   ;;  %v2231_v1 = vmov 0.0   ;;  %vm59_vm1 = vcmask 130048  }
  0x14   :  { %2005 = vmatprep.subr.bf16.mxu1 %v2229_v0  ;;  %1833 = vmatprep.mubr.msk.f32.mxu1 %vm2230_vm0, %v2231_v1  ;;  %v50_v2 = vld [vmem:[%s2539_s1] sm:$0xff]  ;;  %v51_v3 = vld [vmem:[%s2539_s1 + $0x8] sm:$0xff]  ;;  %v40_v9 = vld [vmem:[%s2540_s2 + $0x10] sm:$0xff]  ;;  %s2232_s26 = smov 64   ;;  %vm198_vm2 = vcmask 261120   ;;  %s2234_s15 = smov [#allocation6]  }
  0x15   :  { %v38_v4 = vld [vmem:[%s2540_s2] sm:$0xff]  ;;  %v2001_v5 = vpack.c.bf16 %v51_v3, %v50_v2  ;;  %v39_v6 = vld [vmem:[%s2540_s2 + $0x8] sm:$0xff]  ;;  %v41_v10 = vld [vmem:[%s2540_s2 + $0x18] sm:$0xff]  ;;  %s1677_s16 = sshll.u32 %s2234_s15, 4  ;;  %s1678_s16 = int_to_ptr.vmem [resolvable:$true] %s1677_s16 }
  0x16   :  { %v42_v7 = vld [vmem:[%s2538_s0] sm:$0xff]  ;;  %v2300_v8 = vpack.c.bf16 %v39_v6, %v38_v4  ;;  %v43_v11 = vld [vmem:[%s2538_s0 + $0x8] sm:$0xff]  ;;  %v2313_v12 = vpack.c.bf16 %v41_v10, %v40_v9  ;;  %v44_v50 = vld [vmem:[%s2538_s0 + $0x10] sm:$0xff]  ;;  %p2205_p9 = scmp.lt.s32.totalorder %s1678_s16, %s1678_s16 }
  0x17   :  { %1813 = vmatprep.mubr.msk.f32.mxu0 %vm59_vm1, %v42_v7  ;;  %2002 = vmatprep.subr.bf16.mxu0 %v2001_v5  ;;  %v2330_v13 = vld [vmem:[%s2541_s3] ss:$0 sm:$0xff]  ;;  %s2233_s3 = smov 32   ;;  %v405_v49 = vld [vmem:[#allocation3 + $0x28] sm:$0xff]  ;;  %v45_v52 = vld [vmem:[%s2538_s0 + $0x18] sm:$0xff] }
  0x18   :  { %2007 = vmatpush3.bf16.msra.mxu1 %v2300_v8  ;;  %2004 = vmatpush3.bf16.msra.mxu0 %v2001_v5  ;;  %v404_v48 = vld [vmem:[#allocation3 + $0x20] sm:$0xff]  ;;  %v406_v54 = vld [vmem:[#allocation3 + $0x30] sm:$0xff]  ;;  %v407_v55 = vld [vmem:[#allocation3 + $0x38] sm:$0xff] }
  0x19   :  { %2008 = vmatprep.subr.bf16.mxu1 %v2229_v0  ;;  %2017 = vmatprep.subr.bf16.mxu0 %v2229_v0  ;;  %v2018_v51 = vpack.c.bf16 %v405_v49, %v404_v48  ;;  %v46_v53 = vld [vmem:[%s2538_s0 + $0x20] sm:$0xff]  ;;  %v47_v56 = vld [vmem:[%s2538_s0 + $0x28] sm:$0xff]  ;;  %v2021_v57 = vpack.c.bf16 %v407_v55, %v406_v54  ;;  %v48_v58 = vld [vmem:[%s2538_s0 + $0x30] sm:$0xff] }
  0x1a   :  { %v49_v59 = vld [vmem:[%s2538_s0 + $0x38] sm:$0xff] }
  0x1b   :  { %1814 = vmatmul.mubr.msk.f32.vlgmr.msra.gmra.mrb[0].mxu0 %vm59_vm1, %v43_v11 }
  0x1c   :  { %2010 = vmatpush3.bf16.msra.mxu1 %v2313_v12  ;;  %1816 = vmatprep.mubr.msk.f32.mxu0 %vm59_vm1, %v44_v50 }
  0x1d   :  { %2011 = vmatprep.subr.bf16.mxu1 %v2229_v0  ;;  %2019 = vmatpush3.bf16.msra.mxu0 %v2018_v51 }
  0x1e   :  { %2020 = vmatprep.subr.bf16.mxu0 %v2229_v0 }
  0x1f   :  { %1834 = vmatmul.mubr.f32.vlgmr.msra.gmra.mrb[0].mxu1 %v2231_v1  ;;  %1817 = vmatmul.mubr.msk.f32.gmra.mrb[2].mxu0 %vm59_vm1, %v45_v52 }
  0x20   :  { %2013 = vmatpush3.bf16.msra.mxu1 %v2300_v8  ;;  %1844 = vmatprep.mubr.msk.f32.mxu1 %vm2230_vm0, %v2231_v1 }
  0x21   :  { %2014 = vmatprep.subr.bf16.mxu1 %v2229_v0  ;;  %1819 = vmatprep.mubr.msk.f32.mxu0 %vm59_vm1, %v46_v53 }
  0x22   :  { %2022 = vmatpush3.bf16.msra.mxu0 %v2021_v57 }
  0x23   :  { %1820 = vmatmul.mubr.msk.f32.gmra.mrb[4].mxu0 %vm59_vm1, %v47_v56  ;;  %2029 = vmatprep.subr.bf16.mxu0 %v2229_v0 }
  0x24   :  { %2016 = vmatpush3.bf16.msra.mxu1 %v2313_v12  ;;  %1822 = vmatprep.mubr.msk.f32.mxu0 %vm59_vm1, %v48_v58 }
  0x25   :  { %2023 = vmatprep.subr.bf16.mxu1 %v2229_v0 }
  0x27   :  { %1823 = vmatmul.mubr.msk.f32.gmra.mrb[6].mxu0 %vm59_vm1, %v49_v59 }
  0x28   :  { %1855 = vmatprep.mubr.msk.f32.mxu0 %vm2230_vm0, %v2231_v1 }
  0xee   :  { %v1815_v14 = vpop.f32.mrb[0].mxu0 }
  0xef   :  { %v150_v15 = vpop.f32.mrb[1].mxu0  ;;  %v156_v34 = vadd.f32 %v1815_v14, %v2330_v13 }
  0xf0   :  { %v151_v16 = vadd.f32 %v2330_v13, %v150_v15 }
  0xf2   :  { %v268_v17 = vpop.f32.mrb[0].mxu1  ;;  %v1818_v2 = vpop.f32.mrb[2].mxu0 }
  0xf3   :  { %v272_v18 = vadd.f32 %v268_v17, %v151_v16  ;;  %v1835_v19 = vpop.f32.mrb[1].mxu1  ;;  %v160_v3 = vpop.f32.mrb[3].mxu0 }
  0xf4   :  { %v161_v15 = vadd.f32 %v2330_v13, %v160_v3 }
  0xf5   :  { %2110 = vtanh.f32 %v272_v18  ;;  %v1695_v21 = vmul.f32 -1.442695, %v272_v18 }
  0xf6   :  { %v2380_v4 = vpop.f32.mrb[4].mxu0 }
  0xf7   :  { %2112 = vpow2.f32 %v1695_v21  ;;  %v2382_v5 = vpop.f32.mrb[5].mxu0 }
  0xf8   :  { %v171_v52 = vadd.f32 %v2330_v13, %v2382_v5 }
  0xfa   :  { %v2384_v6 = vpop.f32.mrb[6].mxu0 }
  0xfb   :  { %v2386_v7 = vpop.f32.mrb[7].mxu0 }
  0xff   :  { %v2111_v20 = vpop.eup %2110 }
 0x100   :  { %282 = vrot.lane.b32.xlu0 %v2111_v20, %s2232_s26 }
 0x101   :  { %v2113_v22 = vpop.eup %2112 }
 0x102   :  { %v276_v23 = vadd.f32 1.0, %v2113_v22 }
 0x104   :  { %2114 = vrcp.f32 %v276_v23 }
 0x10e   :  { %v2115_v24 = vpop.eup %2114 }
 0x10f   :  { %v280_v27 = vmul.f32 0.0, %v2115_v24 }
 0x172   :  { %v283_v25 = vpop.permute.xlu0 %282 }
 0x173   :  { %v285_v26 = vmul.f32 %v2115_v24, %v283_v25 }
 0x175   :  { %287 = vrot.lane.b32.xlu0 %v285_v26, %s2233_s3 }
 0x1e7   :  { %v288_v28 = vpop.permute.xlu0 %287 }
 0x1e8   :  { %v290_v29 = vadd.f32 %v288_v28, %v280_v27 }
 0x1ea   :  { %2116 = vtanh.f32 %v290_v29 }
 0x1f4   :  { %v2117_v30 = vpop.eup %2116 }
 0x1f5   :  { %293 = vrot.lane.b32.xlu1 %v2117_v30, %s2232_s26 }
 0x267   :  { %v294_v31 = vpop.permute.xlu1 %293 }
 0x268   :  { %v2336_v32 = vmul.f32 %v2115_v24, %v294_v31 }
 0x26a   :  { %304 = vrot.lane.b32.xlu1 %v2336_v32, %s2233_s3 }
 0x2dc   :  { %v305_v33 = vpop.permute.xlu1 %304 }
 0x2dd   :  { %1845 = vmatmul.mubr.msk.f32.vlgmr.msra.gmra.mrb[2].mxu1 %vm198_vm2, %v305_v33 }
 0x2de   :  { %1866 = vmatprep.mubr.msk.f32.mxu1 %vm2230_vm0, %v2231_v1 }
 0x3b0   :  { %v374_v35 = vpop.f32.mrb[2].mxu1 }
 0x3b1   :  { %v378_v36 = vadd.f32 %v374_v35, %v156_v34  ;;  %v1846_v37 = vpop.f32.mrb[3].mxu1  ;;  %v166_v34 = vadd.f32 %v1818_v2, %v2330_v13 }
 0x3b3   :  { %2118 = vtanh.f32 %v378_v36  ;;  %v1697_v39 = vmul.f32 -1.442695, %v378_v36 }
 0x3b5   :  { %2120 = vpow2.f32 %v1697_v39 }
 0x3bd   :  { %v2119_v38 = vpop.eup %2118 }
 0x3be   :  { %388 = vrot.lane.b32.xlu0 %v2119_v38, %s2232_s26 }
 0x3bf   :  { %v2121_v40 = vpop.eup %2120 }
 0x3c0   :  { %v382_v41 = vadd.f32 1.0, %v2121_v40 }
 0x3c2   :  { %2122 = vrcp.f32 %v382_v41 }
 0x3cc   :  { %v2123_v42 = vpop.eup %2122 }
 0x3cd   :  { %v386_v45 = vmul.f32 %v2123_v42, %v290_v29 }
 0x430   :  { %v389_v43 = vpop.permute.xlu0 %388 }
 0x431   :  { %v391_v44 = vmul.f32 %v2123_v42, %v389_v43 }
 0x433   :  { %393 = vrot.lane.b32.xlu1 %v391_v44, %s2233_s3 }
 0x4a5   :  { %v394_v46 = vpop.permute.xlu1 %393 }
 0x4a6   :  { %v2346_v47 = vadd.f32 %v394_v46, %v386_v45 }
 0x4a8   :  { %2124 = vtanh.f32 %v2346_v47 }
 0x4b2   :  { %v2125_v60 = vpop.eup %2124 }
 0x4b3   :  { %399 = vrot.lane.b32.xlu0 %v2125_v60, %s2232_s26 }
 0x525   :  { %v400_v61 = vpop.permute.xlu0 %399 }
 0x526   :  { %v402_v62 = vmul.f32 %v2123_v42, %v400_v61 }
 0x528   :  { %v403_v63 = vmax.f32 %v402_v62, 0.0  ;;  %560 = vrot.lane.b32.xlu0 %v402_v62, %s2233_s3 }
 0x52a   :  { %409 = vrot.lane.b32.xlu1 %v403_v63, %s2233_s3 }
 0x59a   :  { %v561_v10 = vpop.permute.xlu0 %560 }
 0x59c   :  { %v410_v9 = vpop.permute.xlu1 %409 }
 0x59d   :  { %1856 = vmatmul.mubr.msk.f32.vlgmr.msra.gmra.mrb[8].mxu0 %vm198_vm2, %v410_v9 }
 0x59e   :  { %2031 = vmatpush3.bf16.msra.mxu0 %v2300_v8  ;;  %1877 = vmatprep.mubr.msk.f32.mxu0 %vm2230_vm0, %v2231_v1 }
 0x59f   :  { %2032 = vmatprep.subr.bf16.mxu0 %v2229_v0 }
 0x5a2   :  { %2034 = vmatpush3.bf16.msra.mxu0 %v2313_v12 }
 0x5a3   :  { %2041 = vmatprep.subr.bf16.mxu0 %v2229_v0 }
 0x5a5   :  { %1878 = vmatmul.mubr.msk.f32.vlgmr.msra.gmra.mrb[10].mxu0 %vm198_vm2, %v561_v10 }
 0x5a6   :  { %2043 = vmatpush3.bf16.msra.mxu0 %v2300_v8  ;;  %1899 = vmatprep.mubr.msk.f32.mxu0 %vm2230_vm0, %v2231_v1 }
 0x5a7   :  { %2044 = vmatprep.subr.bf16.mxu0 %v2229_v0 }
 0x5aa   :  { %2046 = vmatpush3.bf16.msra.mxu0 %v2313_v12 }
 0x5ab   :  { %2053 = vmatprep.subr.bf16.mxu0 %v2229_v0 }
 0x670   :  { %v2402_v11 = vpop.f32.mrb[8].mxu0 }
 0x671   :  { %v1857_v14 = vpop.f32.mrb[9].mxu0 }
 0x678   :  { %v630_v16 = vpop.f32.mrb[10].mxu0 }
 0x679   :  { %v634_v17 = vadd.f32 %v630_v16, %v161_v15  ;;  %v1879_v18 = vpop.f32.mrb[11].mxu0  ;;  %v176_v15 = vadd.f32 %v2380_v4, %v2330_v13 }
 0x67b   :  { %2126 = vtanh.f32 %v634_v17  ;;  %v1701_v20 = vmul.f32 -1.442695, %v634_v17 }
 0x67d   :  { %2128 = vpow2.f32 %v1701_v20 }
 0x685   :  { %v2127_v19 = vpop.eup %2126 }
 0x686   :  { %644 = vrot.lane.b32.xlu1 %v2127_v19, %s2232_s26 }
 0x687   :  { %v2129_v21 = vpop.eup %2128 }
 0x688   :  { %v638_v22 = vadd.f32 1.0, %v2129_v21 }
 0x68a   :  { %2130 = vrcp.f32 %v638_v22 }
 0x694   :  { %v2131_v23 = vpop.eup %2130 }
 0x695   :  { %v642_v26 = vmul.f32 %v2131_v23, %v2346_v47 }
 0x6f8   :  { %v645_v24 = vpop.permute.xlu1 %644 }
 0x6f9   :  { %v647_v25 = vmul.f32 %v2131_v23, %v645_v24 }
 0x6fb   :  { %649 = vrot.lane.b32.xlu0 %v647_v25, %s2233_s3 }
 0x76d   :  { %v650_v27 = vpop.permute.xlu0 %649 }
 0x76e   :  { %v652_v28 = vadd.f32 %v650_v27, %v642_v26 }
 0x770   :  { %2132 = vtanh.f32 %v652_v28 }
 0x77a   :  { %v2133_v29 = vpop.eup %2132 }
 0x77b   :  { %655 = vrot.lane.b32.xlu1 %v2133_v29, %s2232_s26 }
 0x7ed   :  { %v656_v30 = vpop.permute.xlu1 %655 }
 0x7ee   :  { %v2409_v31 = vmul.f32 %v2131_v23, %v656_v30 }
 0x7f0   :  { %742 = vrot.lane.b32.xlu0 %v2409_v31, %s2233_s3 }
 0x862   :  { %v743_v33 = vpop.permute.xlu0 %742 }
 0x863   :  { %1900 = vmatmul.mubr.msk.f32.vlgmr.msra.gmra.mrb[12].mxu0 %vm198_vm2, %v743_v33 }
 0x864   :  { %2055 = vmatpush3.bf16.msra.mxu0 %v2300_v8  ;;  %1921 = vmatprep.mubr.msk.f32.mxu0 %vm2230_vm0, %v2231_v1 }
 0x865   :  { %2056 = vmatprep.subr.bf16.mxu0 %v2229_v0 }
 0x868   :  { %2058 = vmatpush3.bf16.msra.mxu0 %v2313_v12 }
 0x869   :  { %2065 = vmatprep.subr.bf16.mxu0 %v2229_v0 }
 0x936   :  { %v812_v35 = vpop.f32.mrb[12].mxu0 }
 0x937   :  { %v816_v36 = vadd.f32 %v812_v35, %v166_v34  ;;  %v1901_v37 = vpop.f32.mrb[13].mxu0  ;;  %v181_v34 = vadd.f32 %v2330_v13, %v2386_v7 }
 0x939   :  { %2134 = vtanh.f32 %v816_v36  ;;  %v1704_v39 = vmul.f32 -1.442695, %v816_v36 }
 0x93b   :  { %2136 = vpow2.f32 %v1704_v39 }
 0x943   :  { %v2135_v38 = vpop.eup %2134 }
 0x944   :  { %826 = vrot.lane.b32.xlu1 %v2135_v38, %s2232_s26 }
 0x945   :  { %v2137_v40 = vpop.eup %2136 }
 0x946   :  { %v820_v41 = vadd.f32 1.0, %v2137_v40 }
 0x948   :  { %2138 = vrcp.f32 %v820_v41 }
 0x952   :  { %v2139_v42 = vpop.eup %2138 }
 0x953   :  { %v824_v45 = vmul.f32 %v2139_v42, %v652_v28 }
 0x9b6   :  { %v827_v43 = vpop.permute.xlu1 %826 }
 0x9b7   :  { %v829_v44 = vmul.f32 %v2139_v42, %v827_v43 }
 0x9b9   :  { %831 = vrot.lane.b32.xlu0 %v829_v44, %s2233_s3 }
 0xa2b   :  { %v832_v46 = vpop.permute.xlu0 %831 }
 0xa2c   :  { %v834_v47 = vadd.f32 %v832_v46, %v824_v45 }
 0xa2e   :  { %2140 = vtanh.f32 %v834_v47 }
 0xa38   :  { %v2141_v48 = vpop.eup %2140 }
 0xa39   :  { %837 = vrot.lane.b32.xlu1 %v2141_v48, %s2232_s26 }
 0xaab   :  { %v838_v49 = vpop.permute.xlu1 %837 }
 0xaac   :  { %v2424_v50 = vmul.f32 %v2139_v42, %v838_v49  ;;  %v186_v49 = vadd.f32 %v2384_v6, %v2330_v13 }
 0xaae   :  { %924 = vrot.lane.b32.xlu0 %v2424_v50, %s2233_s3 }
 0xb20   :  { %v925_v51 = vpop.permute.xlu0 %924 }
 0xb21   :  { %1922 = vmatmul.mubr.msk.f32.vlgmr.msra.gmra.mrb[14].mxu0 %vm198_vm2, %v925_v51 }
 0xb22   :  { %2067 = vmatpush3.bf16.msra.mxu0 %v2300_v8  ;;  %1943 = vmatprep.mubr.msk.f32.mxu0 %vm2230_vm0, %v2231_v1 }
 0xb23   :  { %2068 = vmatprep.subr.bf16.mxu0 %v2229_v0 }
 0xb26   :  { %2070 = vmatpush3.bf16.msra.mxu0 %v2313_v12 }
 0xb27   :  { %2077 = vmatprep.subr.bf16.mxu0 %v2229_v0 }
 0xbf4   :  { %v994_v53 = vpop.f32.mrb[14].mxu0 }
 0xbf5   :  { %v998_v54 = vadd.f32 %v994_v53, %v171_v52  ;;  %v1923_v55 = vpop.f32.mrb[15].mxu0 }
 0xbf6   :  { %v298_v55 = vld [vmem:[#allocation3] sm:$0xff] }
 0xbf7   :  { %2142 = vtanh.f32 %v998_v54  ;;  %v1707_v57 = vmul.f32 -1.442695, %v998_v54 }
 0xbf9   :  { %2144 = vpow2.f32 %v1707_v57 }
 0xc01   :  { %v2143_v56 = vpop.eup %2142 }
 0xc02   :  { %1008 = vrot.lane.b32.xlu1 %v2143_v56, %s2232_s26  ;;  %v299_v56 = vld [vmem:[#allocation3 + $0x8] sm:$0xff] }
 0xc03   :  { %v2145_v58 = vpop.eup %2144  ;;  %v2024_v57 = vpack.c.bf16 %v299_v56, %v298_v55  ;;  %v1571_v55 = vld [vmem:[#allocation3 + $0xe8] sm:$0xff] }
 0xc04   :  { %v1002_v59 = vadd.f32 1.0, %v2145_v58 }
 0xc05   :  { %2025 = vmatpush3.bf16.msra.mxu1 %v2024_v57  ;;  %v1572_v57 = vld [vmem:[#allocation3 + $0xf0] sm:$0xff] }
 0xc06   :  { %2146 = vrcp.f32 %v1002_v59  ;;  %2026 = vmatprep.subr.bf16.mxu1 %v2229_v0 }
 0xc10   :  { %v2147_v60 = vpop.eup %2146 }
 0xc11   :  { %v1006_v63 = vmul.f32 %v2147_v60, %v834_v47 }
 0xc74   :  { %v1009_v61 = vpop.permute.xlu1 %1008 }
 0xc75   :  { %v1011_v62 = vmul.f32 %v2147_v60, %v1009_v61  ;;  %v300_v61 = vld [vmem:[#allocation3 + $0x10] sm:$0xff] }
 0xc77   :  { %1013 = vrot.lane.b32.xlu0 %v1011_v62, %s2233_s3  ;;  %v301_v62 = vld [vmem:[#allocation3 + $0x18] sm:$0xff] }
 0xc78   :  { %v2027_v13 = vpack.c.bf16 %v301_v62, %v300_v61 }
 0xc7a   :  { %2028 = vmatpush3.bf16.msra.mxu1 %v2027_v13 }
 0xc7b   :  { %2035 = vmatprep.subr.bf16.mxu1 %v2229_v0 }
 0xce9   :  { %v1014_v2 = vpop.permute.xlu0 %1013 }
 0xcea   :  { %v1016_v3 = vadd.f32 %v1014_v2, %v1006_v63 }
 0xcec   :  { %2148 = vtanh.f32 %v1016_v3 }
 0xcf6   :  { %v2149_v5 = vpop.eup %2148 }
 0xcf7   :  { %1019 = vrot.lane.b32.xlu1 %v2149_v5, %s2232_s26  ;;  %v841_v5 = vmax.f32 %v2424_v50, 0.0 }
 0xd69   :  { %v1020_v9 = vpop.permute.xlu1 %1019 }
 0xd6a   :  { %v2440_v10 = vmul.f32 %v2147_v60, %v1020_v9 }
 0xd6c   :  { %1106 = vrot.lane.b32.xlu0 %v2440_v10, %s2233_s3 }
 0xdde   :  { %v1107_v14 = vpop.permute.xlu0 %1106 }
 0xddf   :  { %1944 = vmatmul.mubr.msk.f32.vlgmr.msra.gmra.mrb[16].mxu0 %vm198_vm2, %v1107_v14 }
 0xde0   :  { %2079 = vmatpush3.bf16.msra.mxu0 %v2300_v8  ;;  %1965 = vmatprep.mubr.msk.f32.mxu0 %vm2230_vm0, %v2231_v1 }
 0xde1   :  { %2080 = vmatprep.subr.bf16.mxu0 %v2229_v0 }
 0xde4   :  { %2082 = vmatpush3.bf16.msra.mxu0 %v2313_v12 }
 0xde5   :  { %2089 = vmatprep.subr.bf16.mxu0 %v2229_v0 }
 0xeb2   :  { %v1176_v16 = vpop.f32.mrb[16].mxu0 }
 0xeb3   :  { %v1180_v17 = vadd.f32 %v1176_v16, %v176_v15  ;;  %v1945_v18 = vpop.f32.mrb[17].mxu0  ;;  %v660_v15 = vld [vmem:[#allocation3 + $0x40] sm:$0xff]  ;;  %v661_v16 = vld [vmem:[#allocation3 + $0x48] sm:$0xff] }
 0xeb5   :  { %2150 = vtanh.f32 %v1180_v17  ;;  %v1710_v20 = vmul.f32 -1.442695, %v1180_v17 }
 0xeb7   :  { %2152 = vpow2.f32 %v1710_v20  ;;  %v662_v20 = vld [vmem:[#allocation3 + $0x50] sm:$0xff] }
 0xebf   :  { %v2151_v19 = vpop.eup %2150 }
 0xec0   :  { %1190 = vrot.lane.b32.xlu1 %v2151_v19, %s2232_s26  ;;  %v2036_v19 = vpack.c.bf16 %v661_v16, %v660_v15 }
 0xec1   :  { %v2153_v21 = vpop.eup %2152 }
 0xec2   :  { %v1184_v22 = vadd.f32 1.0, %v2153_v21  ;;  %v663_v21 = vld [vmem:[#allocation3 + $0x58] sm:$0xff] }
 0xec3   :  { %v2039_v50 = vpack.c.bf16 %v663_v21, %v662_v20 }
 0xec4   :  { %2154 = vrcp.f32 %v1184_v22 }
 0xece   :  { %v2155_v23 = vpop.eup %2154 }
 0xecf   :  { %v1188_v26 = vmul.f32 %v2155_v23, %v1016_v3  ;;  %v297_v3 = vmax.f32 %v2336_v32, 0.0 }
 0xf32   :  { %v1191_v24 = vpop.permute.xlu1 %1190 }
 0xf33   :  { %v1193_v25 = vmul.f32 %v2155_v23, %v1191_v24  ;;  %v1023_v24 = vmax.f32 %v2440_v10, 0.0  ;;  %v1024_v10 = vld [vmem:[#allocation3 + $0x80] sm:$0xff] }
 0xf35   :  { %1195 = vrot.lane.b32.xlu0 %v1193_v25, %s2233_s3 }
 0xfa7   :  { %v1196_v27 = vpop.permute.xlu0 %1195 }
 0xfa8   :  { %v1198_v4 = vadd.f32 %v1196_v27, %v1188_v26  ;;  %v842_v26 = vld [vmem:[#allocation3 + $0x60] sm:$0xff]  ;;  %v843_v27 = vld [vmem:[#allocation3 + $0x68] sm:$0xff] }
 0xfaa   :  { %2156 = vtanh.f32 %v1198_v4 }
 0xfb4   :  { %v2157_v28 = vpop.eup %2156 }
 0xfb5   :  { %1201 = vrot.lane.b32.xlu1 %v2157_v28, %s2232_s26 }
0x1027   :  { %v1202_v29 = vpop.permute.xlu1 %1201 }
0x1028   :  { %v2456_v30 = vmul.f32 %v2155_v23, %v1202_v29  ;;  %v659_v23 = vmax.f32 %v2409_v31, 0.0  ;;  %v2048_v29 = vpack.c.bf16 %v843_v27, %v842_v26 }
0x102a   :  { %1288 = vrot.lane.b32.xlu0 %v2456_v30, %s2233_s3  ;;  %v1205_v9 = vmax.f32 %v2456_v30, 0.0 }
0x109c   :  { %v1289_v33 = vpop.permute.xlu0 %1288 }
0x109d   :  { %1966 = vmatmul.mubr.msk.f32.vlgmr.msra.gmra.mrb[18].mxu0 %vm198_vm2, %v1289_v33  ;;  %v844_v33 = vld [vmem:[#allocation3 + $0x70] sm:$0xff] }
0x109e   :  { %2091 = vmatpush3.bf16.msra.mxu0 %v2300_v8  ;;  %1987 = vmatprep.mubr.msk.f32.mxu0 %vm2230_vm0, %v2231_v1 }
0x109f   :  { %2092 = vmatprep.subr.bf16.mxu0 %v2229_v0 }
0x10a2   :  { %2094 = vmatpush3.bf16.msra.mxu0 %v2313_v12 }
0x1170   :  { %v1358_v35 = vpop.f32.mrb[18].mxu0 }
0x1171   :  { %v1362_v36 = vadd.f32 %v1358_v35, %v181_v34  ;;  %v1967_v37 = vpop.f32.mrb[19].mxu0  ;;  %v845_v34 = vld [vmem:[#allocation3 + $0x78] sm:$0xff] }
0x1172   :  { %v2051_v31 = vpack.c.bf16 %v845_v34, %v844_v33 }
0x1173   :  { %2158 = vtanh.f32 %v1362_v36  ;;  %v1713_v39 = vmul.f32 -1.442695, %v1362_v36  ;;  %v1025_v36 = vld [vmem:[#allocation3 + $0x88] sm:$0xff] }
0x1174   :  { %v2060_v37 = vpack.c.bf16 %v1025_v36, %v1024_v10 }
0x1175   :  { %2160 = vpow2.f32 %v1713_v39  ;;  %v1027_v39 = vld [vmem:[#allocation3 + $0x98] sm:$0xff] }
0x117d   :  { %v2159_v38 = vpop.eup %2158 }
0x117e   :  { %1372 = vrot.lane.b32.xlu1 %v2159_v38, %s2232_s26  ;;  %v1026_v38 = vld [vmem:[#allocation3 + $0x90] sm:$0xff] }
0x117f   :  { %v2161_v8 = vpop.eup %2160 }
0x1180   :  { %v1366_v40 = vadd.f32 1.0, %v2161_v8 }
0x1182   :  { %2162 = vrcp.f32 %v1366_v40  ;;  %v2063_v40 = vpack.c.bf16 %v1027_v39, %v1026_v38 }
0x118c   :  { %v2163_v41 = vpop.eup %2162 }
0x118d   :  { %v1370_v12 = vmul.f32 %v2163_v41, %v1198_v4 }
0x11f0   :  { %v1373_v42 = vpop.permute.xlu1 %1372 }
0x11f1   :  { %v1375_v43 = vmul.f32 %v2163_v41, %v1373_v42  ;;  %v1207_v42 = vld [vmem:[#allocation3 + $0xa8] sm:$0xff] }
0x11f3   :  { %1377 = vrot.lane.b32.xlu0 %v1375_v43, %s2233_s3 }
0x1265   :  { %v1378_v44 = vpop.permute.xlu0 %1377 }
0x1266   :  { %v1380_v7 = vadd.f32 %v1378_v44, %v1370_v12  ;;  %v1208_v12 = vld [vmem:[#allocation3 + $0xb0] sm:$0xff]  ;;  %v1209_v44 = vld [vmem:[#allocation3 + $0xb8] sm:$0xff] }
0x1268   :  { %2164 = vtanh.f32 %v1380_v7 }
0x1272   :  { %v2165_v45 = vpop.eup %2164 }
0x1273   :  { %1383 = vrot.lane.b32.xlu1 %v2165_v45, %s2232_s26  ;;  %v2075_v45 = vpack.c.bf16 %v1209_v44, %v1208_v12 }
0x12e5   :  { %v1384_v46 = vpop.permute.xlu1 %1383 }
0x12e6   :  { %v1386_v47 = vmul.f32 %v2163_v41, %v1384_v46  ;;  %v1206_v41 = vld [vmem:[#allocation3 + $0xa0] sm:$0xff] }
0x12e7   :  { %v2072_v43 = vpack.c.bf16 %v1207_v42, %v1206_v41  ;;  %v1388_v46 = vld [vmem:[#allocation3 + $0xc0] sm:$0xff] }
0x12e8   :  { %1470 = vrot.lane.b32.xlu0 %v1386_v47, %s2233_s3  ;;  %v1387_v25 = vmax.f32 %v1386_v47, 0.0  ;;  %v1389_v47 = vld [vmem:[#allocation3 + $0xc8] sm:$0xff] }
0x135a   :  { %v1471_v48 = vpop.permute.xlu0 %1470 }
0x135b   :  { %1988 = vmatmul.mubr.msk.f32.vlgmr.msra.gmra.mrb[20].mxu0 %vm198_vm2, %v1471_v48  ;;  %v2084_v48 = vpack.c.bf16 %v1389_v47, %v1388_v46 }
0x142e   :  { %v1540_v51 = vpop.f32.mrb[20].mxu0 }
0x142f   :  { %v1544_v52 = vadd.f32 %v1540_v51, %v186_v49  ;;  %v1989_v53 = vpop.f32.mrb[21].mxu0  ;;  %v1390_v49 = vld [vmem:[#allocation3 + $0xd0] sm:$0xff]  ;;  %v1391_v51 = vld [vmem:[#allocation3 + $0xd8] sm:$0xff] }
0x1430   :  { %v2087_v53 = vpack.c.bf16 %v1391_v51, %v1390_v49 }
0x1431   :  { %2166 = vtanh.f32 %v1544_v52  ;;  %v1716_v58 = vmul.f32 -1.442695, %v1544_v52 }
0x1433   :  { %2168 = vpow2.f32 %v1716_v58  ;;  %v1573_v58 = vld [vmem:[#allocation3 + $0xf8] sm:$0xff] }
0x143b   :  { %v2167_v54 = vpop.eup %2166 }
0x143c   :  { %1554 = vrot.lane.b32.xlu1 %v2167_v54, %s2232_s26  ;;  %v1570_v54 = vld [vmem:[#allocation3 + $0xe0] sm:$0xff] }
0x143d   :  { %v2169_v59 = vpop.eup %2168  ;;  %v2096_v56 = vpack.c.bf16 %v1571_v55, %v1570_v54 }
0x143e   :  { %v1548_v60 = vadd.f32 1.0, %v2169_v59 }
0x1440   :  { %2170 = vrcp.f32 %v1548_v60  ;;  %v2099_v60 = vpack.c.bf16 %v1573_v58, %v1572_v57 }
0x144a   :  { %v2171_v6 = vpop.eup %2170 }
0x144b   :  { %v1552_v14 = vmul.f32 %v2171_v6, %v1380_v7 }
0x14ae   :  { %v1555_v63 = vpop.permute.xlu1 %1554 }
0x14af   :  { %v1557_v2 = vmul.f32 %v2171_v6, %v1555_v63 }
0x14b1   :  { %1559 = vrot.lane.b32.xlu0 %v1557_v2, %s2233_s3 }
0x14b5   :  { %484 = vrot.lane.b32.xlu0 %v297_v3, %s2233_s3 }
0x14b9   :  { %847 = vrot.lane.b32.xlu0 %v841_v5, %s2233_s3 }
0x14bd   :  { %1211 = vrot.lane.b32.xlu0 %v1205_v9, %s2233_s3 }
0x1523   :  { %v1560_v17 = vpop.permute.xlu0 %1559 }
0x1524   :  { %v1562_v18 = vadd.f32 %v1560_v17, %v1552_v14 }
0x1526   :  { %2172 = vtanh.f32 %v1562_v18 }
0x1527   :  { %v485_v32 = vpop.permute.xlu0 %484 }
0x1528   :  { %1867 = vmatmul.mubr.msk.f32.vlgmr.msra.gmra.mrb[4].mxu1 %vm198_vm2, %v485_v32  ;;  %v1718_v32 = vld [vmem:[%s2543_s5] ss:$0 sm:$0xff]  ;;  %s2200_s5 = scalar_lea.vmem %s1678_s16, 128 }
0x1529   :  { %2037 = vmatpush3.bf16.msra.mxu1 %v2036_v19  ;;  %1888 = vmatprep.mubr.msk.f32.mxu1 %vm2230_vm0, %v2231_v1  ;;  %p2201_p8 = scmp.ne.s32.totalorder %s1678_s16, %s2200_s5  ;;  %p2206_p10 = scmp.lt.s32.totalorder %s2200_s5, %s2200_s5 }
0x152a   :  { %2038 = vmatprep.subr.bf16.mxu1 %v2229_v0 }
0x152b   :  { %v848_v8 = vpop.permute.xlu0 %847  ;;  %p2207_p11 = por %p2206_p10, %p2205_p9 }
0x152d   :  { %2040 = vmatpush3.bf16.msra.mxu1 %v2039_v50  ;;  %p2208_p12 = pnand %p2207_p11, %p2201_p8 }
0x152e   :  { %2047 = vmatprep.subr.bf16.mxu1 %v2229_v0 }
0x152f   :  { %v1212_v52 = vpop.permute.xlu0 %1211 }
0x1530   :  { %v2173_v22 = vpop.eup %2172 }
0x1531   :  { %1565 = vrot.lane.b32.xlu1 %v2173_v22, %s2232_s26 }
0x1535   :  { %665 = vrot.lane.b32.xlu1 %v659_v23, %s2233_s3 }
0x1539   :  { %1029 = vrot.lane.b32.xlu1 %v1023_v24, %s2233_s3 }
0x153d   :  { %1393 = vrot.lane.b32.xlu1 %v1387_v25, %s2233_s3 }
0x15a3   :  { %v1566_v4 = vpop.permute.xlu1 %1565 }
0x15a4   :  { %v1568_v28 = vmul.f32 %v2171_v6, %v1566_v4 }
0x15a6   :  { %v1569_v30 = vmax.f32 %v1568_v28, 0.0 }
0x15a7   :  { %v666_v35 = vpop.permute.xlu1 %665 }
0x15a8   :  { %1575 = vrot.lane.b32.xlu0 %v1569_v30, %s2233_s3  ;;  %1889 = vmatmul.mubr.msk.f32.vlgmr.msra.gmra.mrb[6].mxu1 %vm198_vm2, %v666_v35 }
0x15a9   :  { %2049 = vmatpush3.bf16.msra.mxu1 %v2048_v29  ;;  %1910 = vmatprep.mubr.msk.f32.mxu1 %vm2230_vm0, %v2231_v1 }
0x15aa   :  { %2050 = vmatprep.subr.bf16.mxu1 %v2229_v0 }
0x15ab   :  { %v1030_v7 = vpop.permute.xlu1 %1029 }
0x15ad   :  { %2052 = vmatpush3.bf16.msra.mxu1 %v2051_v31 }
0x15ae   :  { %2059 = vmatprep.subr.bf16.mxu1 %v2229_v0 }
0x15af   :  { %v1394_v59 = vpop.permute.xlu1 %1393 }
0x15b0   :  { %1911 = vmatmul.mubr.msk.f32.vlgmr.msra.gmra.mrb[8].mxu1 %vm198_vm2, %v848_v8 }
0x15b1   :  { %2061 = vmatpush3.bf16.msra.mxu1 %v2060_v37  ;;  %1932 = vmatprep.mubr.msk.f32.mxu1 %vm2230_vm0, %v2231_v1 }
0x15b2   :  { %2062 = vmatprep.subr.bf16.mxu1 %v2229_v0 }
0x15b5   :  { %2064 = vmatpush3.bf16.msra.mxu1 %v2063_v40 }
0x15b6   :  { %2071 = vmatprep.subr.bf16.mxu1 %v2229_v0 }
0x15b8   :  { %1933 = vmatmul.mubr.msk.f32.vlgmr.msra.gmra.mrb[10].mxu1 %vm198_vm2, %v1030_v7 }
0x15b9   :  { %2073 = vmatpush3.bf16.msra.mxu1 %v2072_v43  ;;  %1954 = vmatprep.mubr.msk.f32.mxu1 %vm2230_vm0, %v2231_v1 }
0x15ba   :  { %2074 = vmatprep.subr.bf16.mxu1 %v2229_v0 }
0x15bd   :  { %2076 = vmatpush3.bf16.msra.mxu1 %v2075_v45 }
0x15be   :  { %2083 = vmatprep.subr.bf16.mxu1 %v2229_v0 }
0x15c0   :  { %1955 = vmatmul.mubr.msk.f32.vlgmr.msra.gmra.mrb[12].mxu1 %vm198_vm2, %v1212_v52 }
0x15c1   :  { %2085 = vmatpush3.bf16.msra.mxu1 %v2084_v48  ;;  %1976 = vmatprep.mubr.msk.f32.mxu1 %vm2230_vm0, %v2231_v1 }
0x15c2   :  { %2086 = vmatprep.subr.bf16.mxu1 %v2229_v0 }
0x15c5   :  { %2088 = vmatpush3.bf16.msra.mxu1 %v2087_v53 }
0x15c6   :  { %2095 = vmatprep.subr.bf16.mxu1 %v2229_v0 }
0x15c8   :  { %1977 = vmatmul.mubr.msk.f32.vlgmr.msra.gmra.mrb[14].mxu1 %vm198_vm2, %v1394_v59 }
0x15c9   :  { %2097 = vmatpush3.bf16.msra.mxu1 %v2096_v56  ;;  %1998 = vmatprep.mubr.msk.f32.mxu1 %vm2230_vm0, %v2231_v1 }
0x15ca   :  { %2098 = vmatprep.subr.bf16.mxu1 %v2229_v0 }
0x15cd   :  { %2100 = vmatpush3.bf16.msra.mxu1 %v2099_v60 }
0x15fb   :  { %v554_v61 = vpop.f32.mrb[4].mxu1 }
0x15fc   :  { %v555_v62 = vadd.f32 %v554_v61, %v2402_v11  ;;  %v1868_v13 = vpop.f32.mrb[5].mxu1 }
0x161a   :  { %v1576_v6 = vpop.permute.xlu0 %1575 }
0x161b   :  { %1999 = vmatmul.mubr.msk.f32.vlgmr.msra.gmra.mrb[16].mxu1 %vm198_vm2, %v1576_v6 }
0x167b   :  { %v735_v63 = vpop.f32.mrb[6].mxu1 }
0x167c   :  { %v739_v2 = vadd.f32 %v735_v63, %v555_v62  ;;  %v1890_v3 = vpop.f32.mrb[7].mxu1 }
0x1683   :  { %v917_v5 = vpop.f32.mrb[8].mxu1 }
0x1684   :  { %v921_v9 = vadd.f32 %v917_v5, %v739_v2  ;;  %v1912_v14 = vpop.f32.mrb[9].mxu1 }
0x168b   :  { %v1099_v15 = vpop.f32.mrb[10].mxu1 }
0x168c   :  { %v1103_v16 = vadd.f32 %v1099_v15, %v921_v9  ;;  %v1934_v17 = vpop.f32.mrb[11].mxu1 }
0x1693   :  { %v1281_v1 = vpop.f32.mrb[12].mxu1 }
0x1694   :  { %v1285_v18 = vadd.f32 %v1281_v1, %v1103_v16  ;;  %v1956_v0 = vpop.f32.mrb[13].mxu1 }
0x169b   :  { %v1463_v19 = vpop.f32.mrb[14].mxu1 }
0x169c   :  { %v1467_v20 = vadd.f32 %v1463_v19, %v1285_v18  ;;  %v1978_v21 = vpop.f32.mrb[15].mxu1 }
0x16ee   :  { %v1645_v11 = vpop.f32.mrb[16].mxu1 }
0x16ef   :  { %v1649_v50 = vadd.f32 %v1645_v11, %v1467_v20  ;;  %v2000_v22 = vpop.f32.mrb[17].mxu1 }
0x16f1   :  { %v1657_v23 = vadd.f32 %v1718_v32, %v1649_v50 }
0x16f3   :  { %1658 = vmax.xlane.f32.xlu1 %v1657_v23 }
0x1780   :  { %v1659_v24 = vpop.xlane.xlu1 %1658 }
0x1781   :  { %v1660_v25 = vsub.f32 %v1657_v23, %v1659_v24 }
0x1783   :  { %v1661_v26 = vmul.f32 1.442695, %v1660_v25 }
0x1785   :  { %2174 = vpow2.f32 %v1661_v26 }
0x178f   :  { %v2175_v27 = vpop.eup %2174 }
0x1790   :  { %1663 = vadd.xlane.f32.xlu0 %v2175_v27 }
0x181d   :  { %v1664_v4 = vpop.xlane.xlu0 %1663 }
0x181e   :  { %2176 = vrcp.f32 %v1664_v4 }
0x1828   :  { %v2177_v28 = vpop.eup %2176 }
0x1829   :  { %v1666_v29 = vmul.f32 %v2177_v28, %v1664_v4 }
0x182b   :  { %v1667_v30 = vsub.f32 2.0, %v1666_v29 }
0x182d   :  { %v1668_v33 = vmul.f32 %v2177_v28, %v1667_v30 }
0x182f   :  { %v1669_v34 = vmul.f32 %v2175_v27, %v1668_v33 }
0x1831   :  { %1670 = vst [vmem:[#allocation6] sm:$0xff] %v1669_v34 }
0x1832   :  { %2211 = shalt.err (!%p2208_p12)
}
0x1833   :  { %s2212_s19 = scalar_lea.hbm %s2544_s6, 128 }
0x1834   :  { %p2213_p13 = scmp.ne.s32.totalorder %s2544_s6, %s2212_s19  ;;  %p2216_p0 = scmp.lt.u32.totalorder %s2212_s19, %s2544_s6 }
0x1836   :  { %p2218_p1 = pnand %p2216_p0, %p2213_p13 }
0x1838   :  { %2221 = shalt.err (!%p2218_p1)
}
0x1839   :  { %1680 = dma.vmem_to_hbm [thread:$0]  %s1678_s16, 128, %s2544_s6, [#allocation5]  }
0x183a   :  { %2224 = dma.done.wait [#allocation5], 128  }
0x183b   :  { %2225 = vsyncadd [#allocation5], 4294967168 }
0x183c   :  { %1684 = vsyncpa [#allocation4], 1 }
0x183d   :  { %1685 = vsyncpa [#allocation5], 1 }

</bundles_post_ra>
